<compile_context>
chip_gen: v6e
topology: v6e:2x2x1
jax: 0.10.0
libtpu: 0.0.40
codegen_flags: <defaults>
</compile_context>

<pallas_src>
import functools

import jax
import jax.numpy as jnp
from jax.experimental import pallas as pl
from jax.experimental.pallas import tpu as pltpu


# ---------------------------------------------------------------------------
# Kernel
# ---------------------------------------------------------------------------
def _precoding_kernel(x_ref, w1_ref, b1_ref, w2_ref, b2_ref, w3_ref, b3_ref, o_ref):
    # Layer 1: bf16 MXU matmul, f32 accumulate; bias + LeakyReLU(0.2) in f32.
    h = jnp.dot(x_ref[...], w1_ref[...], preferred_element_type=jnp.float32)
    h = h + b1_ref[...]
    h = jnp.where(h > 0, h, 0.2 * h)
    # dropout1: identity (eval mode)

    # Layer 2
    h = jnp.dot(h.astype(w2_ref.dtype), w2_ref[...],
                preferred_element_type=jnp.float32)
    h = h + b2_ref[...]
    h = jnp.where(h > 0, h, 0.2 * h)
    # dropout2: identity (eval mode)

    # Layer 3
    out = jnp.dot(h.astype(w3_ref.dtype), w3_ref[...],
                  preferred_element_type=jnp.float32)
    out = out + b3_ref[...]
    o_ref[...] = out.astype(o_ref.dtype)


# ---------------------------------------------------------------------------
# Parameter preparation (done ONCE, outside the hot forward path)
# ---------------------------------------------------------------------------
def _round_up(n, m):
    return ((n + m - 1) // m) * m


def prepare_precoding_params(params, compute_dtype=jnp.bfloat16):
    """Pre-transpose to [in, out], zero-pad every dim to a multiple of 128,
    cast weights to `compute_dtype` (bf16 for the MXU), keep biases in f32."""
    w1, b1 = params["w1"], params["b1"]
    w2, b2 = params["w2"], params["b2"]
    w3, b3 = params["w3"], params["b3"]

    Fin, out1, out2, out3 = w1.shape[1], w1.shape[0], w2.shape[0], w3.shape[0]
    Fin_p = _round_up(Fin, 128)
    out1_p = _round_up(out1, 128)
    out2_p = _round_up(out2, 128)
    out3_p = _round_up(out3, 128)

    def prep_w(w, in_p, out_p):
        wt = jnp.zeros((in_p, out_p), compute_dtype)
        return wt.at[: w.shape[1], : w.shape[0]].set(w.T.astype(compute_dtype))

    def prep_b(b, out_p):
        bb = jnp.zeros((1, out_p), jnp.float32)
        return bb.at[0, : b.shape[0]].set(b.astype(jnp.float32))

    return {
        "w1": prep_w(w1, Fin_p, out1_p), "b1": prep_b(b1, out1_p),
        "w2": prep_w(w2, out1_p, out2_p), "b2": prep_b(b2, out2_p),
        "w3": prep_w(w3, out2_p, out3_p), "b3": prep_b(b3, out3_p),
        "dims": (Fin, out1, out2, out3),
        "pdims": (Fin_p, out1_p, out2_p, out3_p),
    }


# ---------------------------------------------------------------------------
# Forward wrapper
# ---------------------------------------------------------------------------
def _choose_tb(B):
    """Batch tile: multiple of 16 rows (native bf16 sublane tile).
    Small batches -> a single grid step (no wasted padded compute).
    Large batches -> >= 2 steps of at most 512 rows (pipelining + dual-TC)."""
    if B <= 512:
        return max(16, _round_up(B, 16))
    return min(512, max(16, _round_up(pl.cdiv(B, 2), 16)))


def precoding_forward(x, prep, *, tb=None):
    """x: [B, 2*nt*nr] float32. prep: output of prepare_precoding_params."""
    B, Fin = x.shape
    Fin_d, out1, out2, out3 = prep["dims"]
    Fin_p, out1_p, out2_p, out3_p = prep["pdims"]
    assert Fin == Fin_d, "feature dim mismatch"

    compute_dtype = prep["w1"].dtype

    if tb is None:
        tb = _choose_tb(B)
    steps = pl.cdiv(B, tb)
    B_pad = steps * tb

    # Pad batch + feature dims (zero rows/cols are inert through the network
    # for the rows/cols we keep) and cast activations to the MXU dtype.
    x_p = jnp.zeros((B_pad, Fin_p), compute_dtype)
    x_p = x_p.at[:B, :Fin].set(x.astype(compute_dtype))

    flops = 2 * B_pad * (Fin_p * out1_p + out1_p * out2_p + out2_p * out3_p)
    bytes_accessed = (
        x_p.size * x_p.dtype.itemsize
        + sum(prep[k].size * prep[k].dtype.itemsize
              for k in ("w1", "b1", "w2", "b2", "w3", "b3"))
        + B_pad * out3_p * 4
    )

    out_padded = pl.pallas_call(
        _precoding_kernel,
        out_shape=jax.ShapeDtypeStruct((B_pad, out3_p), jnp.float32),
        grid_spec=pltpu.PrefetchScalarGridSpec(
            num_scalar_prefetch=0,
            grid=(steps,),
            in_specs=[
                pl.BlockSpec((tb, Fin_p), lambda i: (i, 0)),       # x tile (streamed)
                pl.BlockSpec((Fin_p, out1_p), lambda i: (0, 0)),   # W1 (VMEM-resident)
                pl.BlockSpec((1, out1_p), lambda i: (0, 0)),       # b1
                pl.BlockSpec((out1_p, out2_p), lambda i: (0, 0)),  # W2
                pl.BlockSpec((1, out2_p), lambda i: (0, 0)),       # b2
                pl.BlockSpec((out2_p, out3_p), lambda i: (0, 0)),  # W3
                pl.BlockSpec((1, out3_p), lambda i: (0, 0)),       # b3
            ],
            out_specs=pl.BlockSpec((tb, out3_p), lambda i: (i, 0)),
        ),
        compiler_params=pltpu.CompilerParams(
            dimension_semantics=("parallel",),
        ),
        cost_estimate=pl.CostEstimate(
            flops=flops, transcendentals=0, bytes_accessed=bytes_accessed),
    )(x_p, prep["w1"], prep["b1"], prep["w2"], prep["b2"], prep["w3"], prep["b3"])

    return out_padded[:B, :out3]


# ---------------------------------------------------------------------------
# Init + reference
# ---------------------------------------------------------------------------
def init_precoding_params(key, nr, nt, out1, out2):
    """Mimics nn.Linear default init (uniform +/- 1/sqrt(fan_in)). PyTorch layout:
    w_i: [out_features, in_features], b_i: [out_features]."""
    fin1 = 2 * nt * nr
    fout3 = 2 * nt * nt
    keys = jax.random.split(key, 6)

    def lin(kw, kb, fan_in, fan_out):
        bound = 1.0 / jnp.sqrt(fan_in)
        w = jax.random.uniform(kw, (fan_out, fan_in), jnp.float32, -bound, bound)
        b = jax.random.uniform(kb, (fan_out,), jnp.float32, -bound, bound)
        return w, b

    w1, b1 = lin(keys[0], keys[1], fin1, out1)
    w2, b2 = lin(keys[2], keys[3], out1, out2)
    w3, b3 = lin(keys[4], keys[5], out2, fout3)
    return {"w1": w1, "b1": b1, "w2": w2, "b2": b2, "w3": w3, "b3": b3}


def _reference_forward(x, params):
    # pure-JAX f32 reference (eval-mode dropout = identity)
    h = x @ params["w1"].T + params["b1"]
    h = jnp.where(h > 0, h, 0.2 * h)
    h = h @ params["w2"].T + params["b2"]
    h = jnp.where(h > 0, h, 0.2 * h)
    return h @ params["w3"].T + params["b3"]


if __name__ == "__main__":
    # Small shapes consistent with the module: nr=4, nt=4 -> in=32, out=32
    nr, nt = 4, 4
    out1, out2 = 64, 64
    B = 8

    key = jax.random.PRNGKey(0)
    k_x, k_p = jax.random.split(key)
    x = jax.random.normal(k_x, (B, 2 * nt * nr), jnp.float32)
    params = init_precoding_params(k_p, nr, nt, out1, out2)

    # Prepare (transpose / pad / bf16-cast) weights ONCE, outside the forward.
    prep = prepare_precoding_params(params)

    fwd = jax.jit(functools.partial(precoding_forward, prep=prep))
    y = jax.block_until_ready(fwd(x))

    y_ref = _reference_forward(x, params)
    assert y.shape == (B, 2 * nt * nt)
    # bf16 MXU operands with f32 accumulation -> relaxed tolerance vs f32 reference.
    assert jnp.allclose(y, y_ref, atol=3e-2, rtol=3e-2), (
        float(jnp.max(jnp.abs(y - y_ref))))

    print("KERNEL_OK")
</pallas_src>

<mosaic_0001>
module attributes {stable_mosaic.version = 11 : i64} {
  func.func @_precoding_kernel(%arg0: i32, %arg1: memref<16x128xbf16, #tpu.memory_space<vmem>>, %arg2: memref<128x128xbf16, #tpu.memory_space<vmem>>, %arg3: memref<1x128xf32, #tpu.memory_space<vmem>>, %arg4: memref<128x128xbf16, #tpu.memory_space<vmem>>, %arg5: memref<1x128xf32, #tpu.memory_space<vmem>>, %arg6: memref<128x128xbf16, #tpu.memory_space<vmem>>, %arg7: memref<1x128xf32, #tpu.memory_space<vmem>>, %arg8: memref<16x128xf32, #tpu.memory_space<vmem>>) attributes {dimension_semantics = [#tpu.dimension_semantics<parallel>], iteration_bounds = array<i64: 1>, scalar_prefetch = 0 : i64, scratch_operands = 0 : i64, tpu.core_type = #tpu.core_type<tc>, window_params = [{transform_indices = @transform_0, window_bounds = array<i64: 16, 128>}, {pipeline_mode = #tpu.pipeline_mode<synchronous>, transform_indices = @transform_1, window_bounds = array<i64: 128, 128>}, {pipeline_mode = #tpu.pipeline_mode<synchronous>, transform_indices = @transform_2, window_bounds = array<i64: 1, 128>}, {pipeline_mode = #tpu.pipeline_mode<synchronous>, transform_indices = @transform_3, window_bounds = array<i64: 128, 128>}, {pipeline_mode = #tpu.pipeline_mode<synchronous>, transform_indices = @transform_4, window_bounds = array<i64: 1, 128>}, {pipeline_mode = #tpu.pipeline_mode<synchronous>, transform_indices = @transform_5, window_bounds = array<i64: 128, 128>}, {pipeline_mode = #tpu.pipeline_mode<synchronous>, transform_indices = @transform_6, window_bounds = array<i64: 1, 128>}, {transform_indices = @transform_7, window_bounds = array<i64: 16, 128>}]} {
    %c0 = arith.constant 0 : index
    %c0_0 = arith.constant 0 : index
    %0 = vector.load %arg1[%c0, %c0_0] : memref<16x128xbf16, #tpu.memory_space<vmem>>, vector<16x128xbf16>
    %c0_1 = arith.constant 0 : index
    %c0_2 = arith.constant 0 : index
    %1 = vector.load %arg2[%c0_1, %c0_2] : memref<128x128xbf16, #tpu.memory_space<vmem>>, vector<128x128xbf16>
    %cst = arith.constant dense<0.000000e+00> : vector<16x128xf32>
    %2 = tpu.matmul %0, %1, %cst {dimension_numbers = #tpu.dot_dimension_numbers<[1], [0], [0], [1], [0, 0, 1, 1], [], []>} : vector<16x128xbf16>, vector<128x128xbf16>, vector<16x128xf32> -> vector<16x128xf32>
    %c0_3 = arith.constant 0 : index
    %c0_4 = arith.constant 0 : index
    %3 = vector.load %arg3[%c0_3, %c0_4] : memref<1x128xf32, #tpu.memory_space<vmem>>, vector<1x128xf32>
    %4 = vector.broadcast %3 : vector<1x128xf32> to vector<16x128xf32>
    %5 = arith.addf %2, %4 : vector<16x128xf32>
    %cst_5 = arith.constant 0.000000e+00 : f32
    %6 = vector.broadcast %cst_5 : f32 to vector<16x128xf32>
    %7 = arith.cmpf ogt, %5, %6 : vector<16x128xf32>
    %cst_6 = arith.constant 2.000000e-01 : f32
    %8 = vector.broadcast %cst_6 : f32 to vector<16x128xf32>
    %9 = arith.mulf %8, %5 : vector<16x128xf32>
    %10 = arith.select %7, %5, %9 : vector<16x128xi1>, vector<16x128xf32>
    %11 = arith.truncf %10 : vector<16x128xf32> to vector<16x128xbf16>
    %c0_7 = arith.constant 0 : index
    %c0_8 = arith.constant 0 : index
    %12 = vector.load %arg4[%c0_7, %c0_8] : memref<128x128xbf16, #tpu.memory_space<vmem>>, vector<128x128xbf16>
    %cst_9 = arith.constant dense<0.000000e+00> : vector<16x128xf32>
    %13 = tpu.matmul %11, %12, %cst_9 {dimension_numbers = #tpu.dot_dimension_numbers<[1], [0], [0], [1], [0, 0, 1, 1], [], []>} : vector<16x128xbf16>, vector<128x128xbf16>, vector<16x128xf32> -> vector<16x128xf32>
    %c0_10 = arith.constant 0 : index
    %c0_11 = arith.constant 0 : index
    %14 = vector.load %arg5[%c0_10, %c0_11] : memref<1x128xf32, #tpu.memory_space<vmem>>, vector<1x128xf32>
    %15 = vector.broadcast %14 : vector<1x128xf32> to vector<16x128xf32>
    %16 = arith.addf %13, %15 : vector<16x128xf32>
    %cst_12 = arith.constant 0.000000e+00 : f32
    %17 = vector.broadcast %cst_12 : f32 to vector<16x128xf32>
    %18 = arith.cmpf ogt, %16, %17 : vector<16x128xf32>
    %cst_13 = arith.constant 2.000000e-01 : f32
    %19 = vector.broadcast %cst_13 : f32 to vector<16x128xf32>
    %20 = arith.mulf %19, %16 : vector<16x128xf32>
    %21 = arith.select %18, %16, %20 : vector<16x128xi1>, vector<16x128xf32>
    %22 = arith.truncf %21 : vector<16x128xf32> to vector<16x128xbf16>
    %c0_14 = arith.constant 0 : index
    %c0_15 = arith.constant 0 : index
    %23 = vector.load %arg6[%c0_14, %c0_15] : memref<128x128xbf16, #tpu.memory_space<vmem>>, vector<128x128xbf16>
    %cst_16 = arith.constant dense<0.000000e+00> : vector<16x128xf32>
    %24 = tpu.matmul %22, %23, %cst_16 {dimension_numbers = #tpu.dot_dimension_numbers<[1], [0], [0], [1], [0, 0, 1, 1], [], []>} : vector<16x128xbf16>, vector<128x128xbf16>, vector<16x128xf32> -> vector<16x128xf32>
    %c0_17 = arith.constant 0 : index
    %c0_18 = arith.constant 0 : index
    %25 = vector.load %arg7[%c0_17, %c0_18] : memref<1x128xf32, #tpu.memory_space<vmem>>, vector<1x128xf32>
    %26 = vector.broadcast %25 : vector<1x128xf32> to vector<16x128xf32>
    %27 = arith.addf %24, %26 : vector<16x128xf32>
    %c0_19 = arith.constant 0 : index
    %c0_20 = arith.constant 0 : index
    %28 = vector.load %arg8[%c0_19, %c0_20] : memref<16x128xf32, #tpu.memory_space<vmem>>, vector<16x128xf32>
    tpu.vector_store %arg8[%c0_19, %c0_20], %27 {strides = array<i32>} : memref<16x128xf32, #tpu.memory_space<vmem>>, vector<16x128xf32>,
    return
  }
  func.func @transform_0(%arg0: i32) -> (i32, i32) {
    %c0_i32 = arith.constant 0 : i32
    %c0_i32_0 = arith.constant 0 : i32
    return %arg0, %c0_i32 : i32, i32
  }
  func.func @transform_1(%arg0: i32) -> (i32, i32) {
    %c0_i32 = arith.constant 0 : i32
    %c0_i32_0 = arith.constant 0 : i32
    %c0_i32_1 = arith.constant 0 : i32
    return %c0_i32, %c0_i32_0 : i32, i32
  }
  func.func @transform_2(%arg0: i32) -> (i32, i32) {
    %c0_i32 = arith.constant 0 : i32
    %c0_i32_0 = arith.constant 0 : i32
    %c0_i32_1 = arith.constant 0 : i32
    return %c0_i32, %c0_i32_0 : i32, i32
  }
  func.func @transform_3(%arg0: i32) -> (i32, i32) {
    %c0_i32 = arith.constant 0 : i32
    %c0_i32_0 = arith.constant 0 : i32
    %c0_i32_1 = arith.constant 0 : i32
    return %c0_i32, %c0_i32_0 : i32, i32
  }
  func.func @transform_4(%arg0: i32) -> (i32, i32) {
    %c0_i32 = arith.constant 0 : i32
    %c0_i32_0 = arith.constant 0 : i32
    %c0_i32_1 = arith.constant 0 : i32
    return %c0_i32, %c0_i32_0 : i32, i32
  }
  func.func @transform_5(%arg0: i32) -> (i32, i32) {
    %c0_i32 = arith.constant 0 : i32
    %c0_i32_0 = arith.constant 0 : i32
    %c0_i32_1 = arith.constant 0 : i32
    return %c0_i32, %c0_i32_0 : i32, i32
  }
  func.func @transform_6(%arg0: i32) -> (i32, i32) {
    %c0_i32 = arith.constant 0 : i32
    %c0_i32_0 = arith.constant 0 : i32
    %c0_i32_1 = arith.constant 0 : i32
    return %c0_i32, %c0_i32_0 : i32, i32
  }
  func.func @transform_7(%arg0: i32) -> (i32, i32) {
    %c0_i32 = arith.constant 0 : i32
    %c0_i32_0 = arith.constant 0 : i32
    return %arg0, %c0_i32 : i32, i32
  }
}

</mosaic_0001>

<bundles_post_ra>
// kernel: precoding_forward.1
= control target key start
LH: loop header
LB: loop body
LE: loop exit
PB: predicated region body
PF: predicated region fallthrough
CT: control target
= control target key end

     0   :  { %12 = vsyncpa [#allocation3], 0  ;;  %s749_s0 = inlined_call_operand.vmem [shape: bf16[16,128], index: 0, kind: input, shape index: {}]   ;;  %s750_s1 = inlined_call_operand.hbm [shape: bf16[128,128], index: 1, kind: input, shape index: {}]   ;;  %s751_s2 = inlined_call_operand.vmem [shape: f32[1,128], index: 2, kind: input, shape index: {}]   ;;  %s752_s3 = inlined_call_operand.hbm [shape: bf16[128,128], index: 3, kind: input, shape index: {}]   ;;  %s753_s4 = inlined_call_operand.vmem [shape: f32[1,128], index: 4, kind: input, shape index: {}]   ;;  %s754_s5 = inlined_call_operand.hbm [shape: bf16[128,128], index: 5, kind: input, shape index: {}]   ;;  %s755_s6 = inlined_call_operand.vmem [shape: f32[1,128], index: 6, kind: input, shape index: {}]   ;;  %s756_s7 = inlined_call_operand.vmem [shape: f32[16,128], index: 7, kind: output, shape index: {}]  }
   0x1   :  { %13 = vsyncpa [#allocation5], 0  ;;  %s645_s24 = smov [#allocation4]   ;;  %s646_s26 = smov [#allocation2]  }
   0x2   :  { %s35_s25 = sshll.u32 %s645_s24, 4  ;;  %s21_s27 = sshll.u32 %s646_s26, 4  ;;  %s36_s25 = int_to_ptr.vmem [resolvable:$true] %s35_s25  ;;  %s22_s27 = int_to_ptr.vmem [resolvable:$true] %s21_s27 }
   0x3   :  { %s589_s28 = scalar_lea.vmem %s36_s25, 1024  ;;  %p594_p1 = scmp.lt.s32.totalorder %s36_s25, %s36_s25 }
   0x4   :  { %p590_p0 = scmp.ne.s32.totalorder %s36_s25, %s589_s28  ;;  %p595_p2 = scmp.lt.s32.totalorder %s589_s28, %s589_s28 }
   0x6   :  { %p596_p3 = por %p595_p2, %p594_p1 }
   0x8   :  { %p597_p4 = pnand %p596_p3, %p590_p0 }
   0xa   :  { %600 = shalt.err (!%p597_p4)
}
   0xb   :  { %s647_s29 = smov 64   ;;  %s648_s30 = smov 4  }
   0xc   :  { %41 = dma.hbm_to_vmem [thread:$0]  %s752_s3, 1024, %s36_s25, [#allocation5], %s647_s29, %s647_s29, %s648_s30  }
   0xd   :  { %s609_s10 = scalar_lea.vmem %s22_s27, 1024  ;;  %p614_p6 = scmp.lt.s32.totalorder %s22_s27, %s22_s27 }
   0xe   :  { %p610_p5 = scmp.ne.s32.totalorder %s22_s27, %s609_s10  ;;  %p615_p7 = scmp.lt.s32.totalorder %s609_s10, %s609_s10 }
  0x10   :  { %p616_p8 = por %p615_p7, %p614_p6 }
  0x12   :  { %p617_p9 = pnand %p616_p8, %p610_p5 }
  0x14   :  { %620 = shalt.err (!%p617_p9)
}
  0x15   :  { %27 = dma.hbm_to_vmem [thread:$0]  %s750_s1, 1024, %s22_s27, [#allocation3], %s647_s29, %s647_s29, %s648_s30  }
  0x16   :  { %s649_s13 = smov [#allocation6]  }
  0x17   :  { %s49_s14 = sshll.u32 %s649_s13, 4  ;;  %s50_s14 = int_to_ptr.vmem [resolvable:$true] %s49_s14 }
  0x18   :  { %s629_s15 = scalar_lea.vmem %s50_s14, 1024  ;;  %p634_p11 = scmp.lt.s32.totalorder %s50_s14, %s50_s14 }
  0x19   :  { %p630_p10 = scmp.ne.s32.totalorder %s50_s14, %s629_s15  ;;  %p635_p12 = scmp.lt.s32.totalorder %s629_s15, %s629_s15 }
  0x1b   :  { %p636_p13 = por %p635_p12, %p634_p11 }
  0x1d   :  { %p637_p0 = pnand %p636_p13, %p630_p10 }
  0x1f   :  { %640 = shalt.err (!%p637_p0)
}
  0x20   :  { %55 = dma.hbm_to_vmem [thread:$0]  %s754_s5, 1024, %s50_s14, [#allocation5], %s647_s29, %s647_s29, %s648_s30  }
  0x21   :  { %641 = dma.done.wait [#allocation3], 1024  }
  0x22   :  { %642 = vsyncadd [#allocation3], 4294966272 }
  0x23   :  { %643 = dma.done.wait [#allocation5], 2048  }
  0x24   :  { %644 = vsyncadd [#allocation5], 4294965248  ;;  %v650_v0 = vmov 0.0   ;;  %vm651_vm0 = vmmov 0   ;;  %v556_v1 = vld [vmem:[#allocation2 + $0x38] sm:$0xff]   ;;  %v557_v2 = vld [vmem:[#allocation2 + $0x30] sm:$0xff]  }
  0x25   :  { %489 = vmatprep.subr.bf16.mxu0 %v650_v0  ;;  %505 = vmatprep.mubr.msk.bf16.mxu0 %vm651_vm0, %v650_v0  ;;  %v558_v3 = vld [vmem:[#allocation2 + $0x28] sm:$0xff]   ;;  %v565_v4 = vld [vmem:[#allocation4 + $0x38] sm:$0xff]   ;;  %v559_v5 = vld [vmem:[#allocation2 + $0x20] sm:$0xff]  }
  0x26   :  { %509 = vmatprep.subr.bf16.mxu1 %v650_v0  ;;  %525 = vmatprep.mubr.msk.bf16.mxu1 %vm651_vm0, %v650_v0  ;;  %v566_v6 = vld [vmem:[#allocation4 + $0x30] sm:$0xff]   ;;  %v560_v7 = vld [vmem:[#allocation2 + $0x18] sm:$0xff]   ;;  %v567_v8 = vld [vmem:[#allocation4 + $0x28] sm:$0xff]  }
  0x27   :  { %490 = vmatpush3.bf16.msra.mxu0 %v556_v1  ;;  %510 = vmatpush3.bf16.msra.mxu1 %v565_v4  ;;  %v561_v9 = vld [vmem:[#allocation2 + $0x10] sm:$0xff]   ;;  %v568_v10 = vld [vmem:[#allocation4 + $0x20] sm:$0xff]   ;;  %v562_v11 = vld [vmem:[#allocation2 + $0x8] sm:$0xff]  }
  0x28   :  { %491 = vmatprep.subr.bf16.mxu0 %v650_v0  ;;  %511 = vmatprep.subr.bf16.mxu1 %v650_v0  ;;  %v569_v12 = vld [vmem:[#allocation4 + $0x18] sm:$0xff]   ;;  %v563_v13 = vld [vmem:[#allocation2] sm:$0xff]   ;;  %v570_v15 = vld [vmem:[#allocation4 + $0x10] sm:$0xff]  }
  0x29   :  { %v564_v14 = vld [vmem:[%s749_s0] sm:$0xff]   ;;  %v571_v16 = vld [vmem:[#allocation4 + $0x8] sm:$0xff]   ;;  %v573_v18 = vld [vmem:[#allocation6 + $0x38] sm:$0xff]  }
  0x2a   :  { %v572_v17 = vld [vmem:[#allocation4] sm:$0xff]   ;;  %v574_v19 = vld [vmem:[#allocation6 + $0x30] sm:$0xff]   ;;  %v575_v20 = vld [vmem:[#allocation6 + $0x28] sm:$0xff]  }
  0x2b   :  { %492 = vmatpush3.bf16.msra.mxu0 %v557_v2  ;;  %512 = vmatpush3.bf16.msra.mxu1 %v566_v6  ;;  %v576_v21 = vld [vmem:[#allocation6 + $0x20] sm:$0xff]   ;;  %v577_v22 = vld [vmem:[#allocation6 + $0x18] sm:$0xff]   ;;  %v578_v35 = vld [vmem:[#allocation6 + $0x10] sm:$0xff]  }
  0x2c   :  { %493 = vmatprep.subr.bf16.mxu0 %v650_v0  ;;  %513 = vmatprep.subr.bf16.mxu1 %v650_v0  ;;  %v434_v23 = vld [vmem:[%s751_s2] ss:$0 sm:$0xff]  ;;  %v579_v36 = vld [vmem:[#allocation6 + $0x8] sm:$0xff]  }
  0x2d   :  { %v580_v37 = vld [vmem:[#allocation6] sm:$0xff]  }
  0x2e   :  { %v444_v38 = vld [vmem:[%s753_s4] ss:$0 sm:$0xff] }
  0x2f   :  { %494 = vmatpush3.bf16.msra.mxu0 %v558_v3  ;;  %514 = vmatpush3.bf16.msra.mxu1 %v567_v8  ;;  %v453_v50 = vld [vmem:[%s755_s6] ss:$0 sm:$0xff] }
  0x30   :  { %495 = vmatprep.subr.bf16.mxu0 %v650_v0  ;;  %515 = vmatprep.subr.bf16.mxu1 %v650_v0 }
  0x33   :  { %496 = vmatpush3.bf16.msra.mxu0 %v559_v5  ;;  %516 = vmatpush3.bf16.msra.mxu1 %v568_v10 }
  0x34   :  { %497 = vmatprep.subr.bf16.mxu0 %v650_v0  ;;  %517 = vmatprep.subr.bf16.mxu1 %v650_v0 }
  0x37   :  { %498 = vmatpush3.bf16.msra.mxu0 %v560_v7  ;;  %518 = vmatpush3.bf16.msra.mxu1 %v569_v12 }
  0x38   :  { %499 = vmatprep.subr.bf16.mxu0 %v650_v0  ;;  %519 = vmatprep.subr.bf16.mxu1 %v650_v0 }
  0x3b   :  { %500 = vmatpush3.bf16.msra.mxu0 %v561_v9  ;;  %520 = vmatpush3.bf16.msra.mxu1 %v570_v15 }
  0x3c   :  { %501 = vmatprep.subr.bf16.mxu0 %v650_v0  ;;  %521 = vmatprep.subr.bf16.mxu1 %v650_v0 }
  0x3f   :  { %502 = vmatpush3.bf16.msra.mxu0 %v562_v11  ;;  %522 = vmatpush3.bf16.msra.mxu1 %v571_v16 }
  0x40   :  { %503 = vmatprep.subr.bf16.mxu0 %v650_v0  ;;  %523 = vmatprep.subr.bf16.mxu1 %v650_v0 }
  0x43   :  { %504 = vmatpush3.bf16.msra.mxu0 %v563_v13  ;;  %524 = vmatpush3.bf16.msra.mxu1 %v572_v17 }
  0x44   :  { %529 = vmatprep.subr.bf16.mxu0 %v650_v0 }
  0x46   :  { %506 = vmatmul.mubr.bf16.vlgmr.msra.gmra.mxu0 %v564_v14 }
  0x47   :  { %545 = vmatprep.mubr.msk.bf16.mxu0 %vm651_vm0, %v650_v0  ;;  %530 = vmatpush3.bf16.msra.mxu0 %v573_v18 }
  0x48   :  { %531 = vmatprep.subr.bf16.mxu0 %v650_v0 }
  0x4b   :  { %532 = vmatpush3.bf16.msra.mxu0 %v574_v19 }
  0x4c   :  { %533 = vmatprep.subr.bf16.mxu0 %v650_v0 }
  0x4f   :  { %534 = vmatpush3.bf16.msra.mxu0 %v575_v20 }
  0x50   :  { %535 = vmatprep.subr.bf16.mxu0 %v650_v0 }
  0x53   :  { %536 = vmatpush3.bf16.msra.mxu0 %v576_v21 }
  0x54   :  { %537 = vmatprep.subr.bf16.mxu0 %v650_v0 }
  0x57   :  { %538 = vmatpush3.bf16.msra.mxu0 %v577_v22 }
  0x58   :  { %539 = vmatprep.subr.bf16.mxu0 %v650_v0 }
  0x5b   :  { %540 = vmatpush3.bf16.msra.mxu0 %v578_v35 }
  0x5c   :  { %541 = vmatprep.subr.bf16.mxu0 %v650_v0 }
  0x5f   :  { %542 = vmatpush3.bf16.msra.mxu0 %v579_v36 }
  0x60   :  { %543 = vmatprep.subr.bf16.mxu0 %v650_v0 }
  0x63   :  { %544 = vmatpush3.bf16.msra.mxu0 %v580_v37 }
 0x106   :  { %v181_v24 = vpop.f32.mrf.mxu0 }
 0x107   :  { %v182_v25 = vadd.f32 %v434_v23, %v181_v24 }
 0x108   :  { %v507_v26 = vpop.f32.mrf.mxu0 }
 0x109   :  { %v190_v28 = vmul.f32 0.2, %v182_v25  ;;  %vm188_vm1 = vcmp.gt.f32.partialorder %v182_v25, 0.0 }
 0x10a   :  { %v184_v27 = vpop.f32.mrf.mxu0 }
 0x10b   :  { %v185_v29 = vadd.f32 %v434_v23, %v184_v27  ;;  %v192_v32 = vsel %vm188_vm1, %v182_v25, %v190_v28 }
 0x10c   :  { %v508_v30 = vpop.f32.mrf.mxu0 }
 0x10d   :  { %vm189_vm2 = vcmp.gt.f32.partialorder %v185_v29, 0.0  ;;  %v191_v31 = vmul.f32 0.2, %v185_v29 }
 0x10f   :  { %v193_v33 = vsel %vm189_vm2, %v185_v29, %v191_v31 }
 0x110   :  { %v194_v34 = vpack.c.bf16 %v193_v33, %v192_v32 }
 0x112   :  { %526 = vmatmul.mubr.bf16.vlgmr.msra.gmra.mxu1 %v194_v34 }
 0x1d2   :  { %v300_v39 = vpop.f32.mrf.mxu1 }
 0x1d3   :  { %v301_v40 = vadd.f32 %v444_v38, %v300_v39 }
 0x1d4   :  { %v527_v41 = vpop.f32.mrf.mxu1 }
 0x1d5   :  { %v309_v43 = vmul.f32 0.2, %v301_v40  ;;  %vm307_vm3 = vcmp.gt.f32.partialorder %v301_v40, 0.0 }
 0x1d6   :  { %v303_v42 = vpop.f32.mrf.mxu1 }
 0x1d7   :  { %v304_v44 = vadd.f32 %v444_v38, %v303_v42  ;;  %v311_v47 = vsel %vm307_vm3, %v301_v40, %v309_v43 }
 0x1d8   :  { %v528_v45 = vpop.f32.mrf.mxu1 }
 0x1d9   :  { %vm308_vm4 = vcmp.gt.f32.partialorder %v304_v44, 0.0  ;;  %v310_v46 = vmul.f32 0.2, %v304_v44 }
 0x1db   :  { %v312_v48 = vsel %vm308_vm4, %v304_v44, %v310_v46 }
 0x1dc   :  { %v313_v49 = vpack.c.bf16 %v312_v48, %v311_v47 }
 0x1de   :  { %546 = vmatmul.mubr.bf16.vlgmr.msra.gmra.mxu0 %v313_v49 }
 0x29e   :  { %v419_v51 = vpop.f32.mrf.mxu0 }
 0x29f   :  { %v420_v52 = vadd.f32 %v453_v50, %v419_v51 }
 0x2a0   :  { %v547_v53 = vpop.f32.mrf.mxu0 }
 0x2a1   :  { %426 = vst [vmem:[%s756_s7] sm:$0xff] %v420_v52 }
 0x2a2   :  { %v422_v54 = vpop.f32.mrf.mxu0 }
 0x2a3   :  { %v423_v55 = vadd.f32 %v453_v50, %v422_v54 }
 0x2a4   :  { %v548_v56 = vpop.f32.mrf.mxu0 }
 0x2a5   :  { %427 = vst [vmem:[%s756_s7 + $0x8] sm:$0xff] %v423_v55 }
 0x2a6   :  { %432 = vsyncpa [#allocation3], 1 }
 0x2a7   :  { %433 = vsyncpa [#allocation5], 1 }

</bundles_post_ra>
